<compile_context>
chip_gen: v6e
topology: v6e:2x2x1
jax: 0.10.0
libtpu: 0.0.40
codegen_flags: <defaults>
</compile_context>

<pallas_src>
import jax
import jax.numpy as jnp
from jax.experimental import pallas as pl
from jax.experimental.pallas import tpu as pltpu


def _round_up(x, m):
    return ((x + m - 1) // m) * m


def _classifier_kernel(h_ref, w_ref, b_ref, pred_ref):
    # h_ref:    [tm, H]     bf16 CLS-token hidden states (one batch tile)
    # w_ref:    [H, Lpad]   bf16 classifier weight (padded cols are zero)
    # b_ref:    [1, Lpad]   f32 bias; padded lanes hold a large negative value
    # pred_ref: [tm, 1]     int32 argmax predictions
    logits = jnp.dot(h_ref[...], w_ref[...], preferred_element_type=jnp.float32)
    logits = logits + b_ref[...]          # f32 epilogue (v5e-safe); masks pad lanes
    pred_ref[...] = jnp.argmax(logits, axis=-1, keepdims=True).astype(jnp.int32)


def classifier_head(h_cls, weight, bias, *, tm=256):
    """preds = argmax(h_cls @ W + b, axis=-1), computed in a Pallas kernel.

    h_cls:  [B, H] float
    weight: [H, L] float   (in_features x out_features)
    bias:   [L] or [1, L]
    returns [B] int32
    """
    B, H = h_cls.shape
    L = weight.shape[1]
    bias = bias.reshape(1, L)

    # ---- wrapper-side, one-time layout prep ----
    # Lane-dense label axis: pad L up to a multiple of 128; padded weight cols
    # are zero and padded bias lanes are a huge negative so argmax ignores them.
    Lpad = _round_up(max(L, 128), 128)
    neg = jnp.finfo(jnp.float32).min
    w_pad = jnp.zeros((H, Lpad), jnp.bfloat16).at[:, :L].set(
        weight.astype(jnp.bfloat16))
    b_pad = jnp.full((1, Lpad), neg, jnp.float32).at[:, :L].set(
        bias.astype(jnp.float32))

    # Batch tiling: tm rows per grid step (multiple of 8), pad B up to a
    # multiple of tm so every block is full.
    tm = min(tm, _round_up(B, 8))
    B_pad = _round_up(B, tm)
    h_pad = jnp.zeros((B_pad, H), jnp.bfloat16).at[:B, :].set(
        h_cls.astype(jnp.bfloat16))

    grid = (B_pad // tm,)
    preds = pl.pallas_call(
        _classifier_kernel,
        out_shape=jax.ShapeDtypeStruct((B_pad, 1), jnp.int32),
        grid_spec=pltpu.PrefetchScalarGridSpec(
            num_scalar_prefetch=0,
            grid=grid,
            in_specs=[
                pl.BlockSpec((tm, H), lambda i: (i, 0)),      # streamed h tiles
                pl.BlockSpec((H, Lpad), lambda i: (0, 0)),    # resident weight
                pl.BlockSpec((1, Lpad), lambda i: (0, 0)),    # resident bias
            ],
            out_specs=pl.BlockSpec((tm, 1), lambda i: (i, 0)),
        ),
        compiler_params=pltpu.CompilerParams(
            dimension_semantics=("parallel",)),
    )(h_pad, w_pad, b_pad)
    return preds[:B, 0]


def identifier_forward(input_ids, params):
    """Mirrors Identifier.forward(input_ids) with labels=None -> argmax preds."""
    # --- synthetic "encoder" stand-in (glue): only the CLS token feeds the
    #     classifier, so only row 0 is embedded + tanh'd. ---
    cls_ids = input_ids[:, 0]                              # [B]
    h_cls = jnp.tanh(params["emb_table"][cls_ids])         # [B, H]
    # --- Pallas hot path: classifier matmul + bias + argmax ---
    return classifier_head(h_cls, params["cls_w"], params["cls_b"])  # [B] int32


def init_params(key, vocab_size, hid_size, num_labels):
    k1, k2, k3 = jax.random.split(key, 3)
    return {
        "emb_table": jax.random.normal(k1, (vocab_size, hid_size), jnp.float32) * 0.02,
        "cls_w": jax.random.normal(k2, (hid_size, num_labels), jnp.float32) * 0.02,
        "cls_b": jax.random.normal(k3, (1, num_labels), jnp.float32) * 0.02,
    }


if __name__ == "__main__":
    key = jax.random.PRNGKey(0)
    vocab_size, hid_size, num_labels = 128, 32, 8
    batch, seq = 2, 8

    kp, kx = jax.random.split(key)
    params = init_params(kp, vocab_size, hid_size, num_labels)
    input_ids = jax.random.randint(kx, (batch, seq), 0, vocab_size, dtype=jnp.int32)

    preds = identifier_forward(input_ids, params)
    jax.block_until_ready(preds)

    # sanity check against a plain-JAX reference using the same bf16 input cast
    h_cls = jnp.tanh(params["emb_table"][input_ids[:, 0]])
    h_bf = h_cls.astype(jnp.bfloat16).astype(jnp.float32)
    w_bf = params["cls_w"].astype(jnp.bfloat16).astype(jnp.float32)
    ref_logits = h_bf @ w_bf + params["cls_b"]
    ref_preds = jnp.argmax(ref_logits, axis=-1).astype(jnp.int32)
    assert preds.shape == (batch,)
    assert bool(jnp.all(preds == ref_preds))

    print("KERNEL_OK")
</pallas_src>

<mosaic_0001>
module attributes {stable_mosaic.version = 11 : i64} {
  func.func @_classifier_kernel(%arg0: i32, %arg1: memref<8x32xbf16, #tpu.memory_space<vmem>>, %arg2: memref<32x128xbf16, #tpu.memory_space<vmem>>, %arg3: memref<1x128xf32, #tpu.memory_space<vmem>>, %arg4: memref<8x1xi32, #tpu.memory_space<vmem>>) attributes {dimension_semantics = [#tpu.dimension_semantics<parallel>], iteration_bounds = array<i64: 1>, scalar_prefetch = 0 : i64, scratch_operands = 0 : i64, tpu.core_type = #tpu.core_type<tc>, window_params = [{transform_indices = @transform_0, window_bounds = array<i64: 8, 32>}, {pipeline_mode = #tpu.pipeline_mode<synchronous>, transform_indices = @transform_1, window_bounds = array<i64: 32, 128>}, {pipeline_mode = #tpu.pipeline_mode<synchronous>, transform_indices = @transform_2, window_bounds = array<i64: 1, 128>}, {transform_indices = @transform_3, window_bounds = array<i64: 8, 1>}]} {
    %c0 = arith.constant 0 : index
    %c0_0 = arith.constant 0 : index
    %0 = vector.load %arg1[%c0, %c0_0] : memref<8x32xbf16, #tpu.memory_space<vmem>>, vector<8x32xbf16>
    %c0_1 = arith.constant 0 : index
    %c0_2 = arith.constant 0 : index
    %1 = vector.load %arg2[%c0_1, %c0_2] : memref<32x128xbf16, #tpu.memory_space<vmem>>, vector<32x128xbf16>
    %cst = arith.constant dense<0.000000e+00> : vector<8x128xf32>
    %2 = tpu.matmul %0, %1, %cst {dimension_numbers = #tpu.dot_dimension_numbers<[1], [0], [0], [1], [0, 0, 1, 1], [], []>} : vector<8x32xbf16>, vector<32x128xbf16>, vector<8x128xf32> -> vector<8x128xf32>
    %c0_3 = arith.constant 0 : index
    %c0_4 = arith.constant 0 : index
    %3 = vector.load %arg3[%c0_3, %c0_4] : memref<1x128xf32, #tpu.memory_space<vmem>>, vector<1x128xf32>
    %4 = vector.broadcast %3 : vector<1x128xf32> to vector<8x128xf32>
    %5 = arith.addf %2, %4 : vector<8x128xf32>
    %6 = tpu.reduce_index %5 {axis = 1 : i32, kind = #tpu.reduction_kind<arg_max>} : vector<8x128xf32> -> vector<8xi32>
    %7 = vector.shape_cast %6 : vector<8xi32> to vector<8x1xi32>
    %c0_5 = arith.constant 0 : index
    %c0_6 = arith.constant 0 : index
    %8 = vector.load %arg4[%c0_5, %c0_6] : memref<8x1xi32, #tpu.memory_space<vmem>>, vector<8x1xi32>
    tpu.vector_store %arg4[%c0_5, %c0_6], %7 {strides = array<i32>} : memref<8x1xi32, #tpu.memory_space<vmem>>, vector<8x1xi32>,
    return
  }
  func.func @transform_0(%arg0: i32) -> (i32, i32) {
    %c0_i32 = arith.constant 0 : i32
    %c0_i32_0 = arith.constant 0 : i32
    return %arg0, %c0_i32 : i32, i32
  }
  func.func @transform_1(%arg0: i32) -> (i32, i32) {
    %c0_i32 = arith.constant 0 : i32
    %c0_i32_0 = arith.constant 0 : i32
    %c0_i32_1 = arith.constant 0 : i32
    return %c0_i32, %c0_i32_0 : i32, i32
  }
  func.func @transform_2(%arg0: i32) -> (i32, i32) {
    %c0_i32 = arith.constant 0 : i32
    %c0_i32_0 = arith.constant 0 : i32
    %c0_i32_1 = arith.constant 0 : i32
    return %c0_i32, %c0_i32_0 : i32, i32
  }
  func.func @transform_3(%arg0: i32) -> (i32, i32) {
    %c0_i32 = arith.constant 0 : i32
    %c0_i32_0 = arith.constant 0 : i32
    return %arg0, %c0_i32 : i32, i32
  }
}

</mosaic_0001>

<bundles_post_ra>
// kernel: tpu_custom_call.1
= control target key start
LH: loop header
LB: loop body
LE: loop exit
PB: predicated region body
PF: predicated region fallthrough
CT: control target
= control target key end

     0   :  { %8 = vsyncpa [#allocation3], 0  ;;  %s224_s0 = inlined_call_operand.hbm [shape: bf16[8,32], index: 0, kind: input, shape index: {}]   ;;  %s225_s1 = inlined_call_operand.hbm [shape: bf16[32,128], index: 1, kind: input, shape index: {}]   ;;  %s226_s2 = inlined_call_operand.vmem [shape: f32[1,128], index: 2, kind: input, shape index: {}]   ;;  %s227_s3 = inlined_call_operand.vmem [shape: s32[8,1], index: 3, kind: output, shape index: {}]  }
   0x1   :  { %9 = vsyncpa [#allocation5], 0  ;;  %s186_s12 = smov [#allocation2]   ;;  %s187_s14 = smov [#allocation4]  }
   0x2   :  { %s16_s13 = sshll.u32 %s186_s12, 4  ;;  %s25_s15 = sshll.u32 %s187_s14, 4  ;;  %s17_s13 = int_to_ptr.vmem [resolvable:$true] %s16_s13  ;;  %s26_s15 = int_to_ptr.vmem [resolvable:$true] %s25_s15 }
   0x3   :  { %s150_s16 = scalar_lea.vmem %s17_s13, 64  ;;  %p155_p1 = scmp.lt.s32.totalorder %s17_s13, %s17_s13 }
   0x4   :  { %p151_p0 = scmp.ne.s32.totalorder %s17_s13, %s150_s16  ;;  %p156_p2 = scmp.lt.s32.totalorder %s150_s16, %s150_s16 }
   0x6   :  { %p157_p3 = por %p156_p2, %p155_p1 }
   0x8   :  { %p158_p4 = pnand %p157_p3, %p151_p0 }
   0xa   :  { %161 = shalt.err (!%p158_p4)
}
   0xb   :  { %19 = dma.hbm_to_vmem [thread:$0]  %s224_s0, 64, %s17_s13, [#allocation3]  }
   0xc   :  { %s170_s19 = scalar_lea.vmem %s26_s15, 256  ;;  %p175_p6 = scmp.lt.s32.totalorder %s26_s15, %s26_s15 }
   0xd   :  { %p171_p5 = scmp.ne.s32.totalorder %s26_s15, %s170_s19  ;;  %p176_p7 = scmp.lt.s32.totalorder %s170_s19, %s170_s19 }
   0xf   :  { %p177_p8 = por %p176_p7, %p175_p6 }
  0x11   :  { %p178_p9 = pnand %p177_p8, %p171_p5 }
  0x13   :  { %181 = shalt.err (!%p178_p9)
}
  0x14   :  { %s188_s20 = smov 64   ;;  %s189_s21 = smov 4  }
  0x15   :  { %31 = dma.hbm_to_vmem [thread:$0]  %s225_s1, 256, %s26_s15, [#allocation5], %s188_s20, %s188_s20, %s189_s21  }
  0x16   :  { %182 = dma.done.wait [#allocation3], 64  }
  0x17   :  { %183 = vsyncadd [#allocation3], 4294967232 }
  0x18   :  { %184 = dma.done.wait [#allocation5], 256  }
  0x19   :  { %185 = vsyncadd [#allocation5], 4294967040  ;;  %v190_v0 = vmov 0.0   ;;  %vm191_vm0 = vmmov 0   ;;  %v140_v1 = vld [vmem:[#allocation4 + $0x8] sm:$0xff]   ;;  %v141_v2 = vld [vmem:[#allocation4] sm:$0xff]  }
  0x1a   :  { %126 = vmatprep.subr.bf16.mxu0 %v190_v0  ;;  %130 = vmatprep.mubr.msk.bf16.mxu0 %vm191_vm0, %v190_v0  ;;  %v41_v3 = vld [vmem:[#allocation2] sm:$0xf]  ;;  %vm65_vm1 = vcmask 261120   ;;  %vm111_vm2 = vcmask 7168  }
  0x1b   :  { %127 = vmatpush3.bf16.msra.mxu0 %v140_v1  ;;  %v119_v4 = vld [vmem:[%s226_s2] ss:$0 sm:$0xff] }
  0x1c   :  { %128 = vmatprep.subr.bf16.mxu0 %v190_v0 }
  0x1f   :  { %129 = vmatpush3.bf16.msra.mxu0 %v141_v2 }
  0x22   :  { %131 = vmatmul.mubr.msk.bf16.vlgmr.msra.gmra.mxu0 %vm65_vm1, %v41_v3 }
  0xe2   :  { %v103_v5 = vpop.f32.mrf.mxu0 }
  0xe3   :  { %v104_v6 = vadd.f32 %v119_v4, %v103_v5 }
  0xe4   :  { %v132_v7 = vpop.f32.mrf.mxu0 }
  0xe5   :  { %109 = vmax.index.xlane.f32.xlu0 %v104_v6 }
  0xe6   :  { %v106_v8 = vpop.f32.mrf.mxu0 }
  0xe8   :  { %v133_v9 = vpop.f32.mrf.mxu0 }
 0x16e   :  { %v110_v10 = vpop.xlane.xlu0 %109 }
 0x16f   :  { %112 = vst.msk [vmem:[%s227_s3] sm:$0xff] %vm111_vm2, %v110_v10 }
 0x170   :  { %117 = vsyncpa [#allocation3], 1 }
 0x171   :  { %118 = vsyncpa [#allocation5], 1 }

</bundles_post_ra>
